<compile_context>
chip_gen: v5e
topology: v5e:2x2
jax: 0.10.0
libtpu: 0.0.40
codegen_flags: <defaults>
</compile_context>

<pallas_src>
import jax
import jax.numpy as jnp
from jax import lax
from jax.experimental import pallas as pl
from jax.experimental.pallas import tpu as pltpu


def _round_up(x: int, m: int) -> int:
    return ((x + m - 1) // m) * m


# ----------------------------- kernels ------------------------------------


def _dec_kernel_fullk(x_ref, w_ref, b_ref, o_ref):
    # Single K slab: MXU result goes straight into the output tile.
    prod = lax.dot_general(
        x_ref[...],
        w_ref[...],
        dimension_numbers=(((1,), (1,)), ((), ())),   # contract K on both
        preferred_element_type=jnp.float32,
    )
    o_ref[...] = (prod + b_ref[...].astype(jnp.float32)).astype(o_ref.dtype)


def _dec_kernel_splitk(x_ref, w_ref, b_ref, o_ref, acc_ref):
    k = pl.program_id(2)

    prod = lax.dot_general(
        x_ref[...],
        w_ref[...],
        dimension_numbers=(((1,), (1,)), ((), ())),
        preferred_element_type=jnp.float32,
    )

    @pl.when(k == 0)
    def _first():                       # write, not zero-init + accumulate
        acc_ref[...] = prod

    @pl.when(k > 0)
    def _acc():
        acc_ref[...] += prod

    @pl.when(k == pl.num_programs(2) - 1)
    def _finalize():
        out = acc_ref[...] + b_ref[...].astype(jnp.float32)
        o_ref[...] = out.astype(o_ref.dtype)


# ----------------------------- wrapper -------------------------------------


def decoder_layer(
    hidden_states,
    weight,
    bias,
    *,
    compute_dtype=jnp.bfloat16,
    out_dtype=None,
    vmem_budget_bytes=24 * 1024 * 1024,   # double-buffered working-set budget
):
    """hidden_states: (..., hidden); weight: (vocab, hidden); bias: (vocab,)."""
    *lead, K = hidden_states.shape
    N, Kw = weight.shape
    assert Kw == K, "weight must be (vocab, hidden)"
    out_dtype = hidden_states.dtype if out_dtype is None else out_dtype
    out_bytes = jnp.dtype(out_dtype).itemsize

    x2d = hidden_states.reshape(-1, K)
    M = x2d.shape[0]

    # bf16 matmul operands (f32 accumulation inside the kernel).  Keep the
    # weight stored in compute_dtype in production so this cast is a no-op.
    if x2d.dtype != compute_dtype:
        x2d = x2d.astype(compute_dtype)
    w = weight if weight.dtype == compute_dtype else weight.astype(compute_dtype)
    cb = jnp.dtype(compute_dtype).itemsize
    bias_bytes = jnp.dtype(bias.dtype).itemsize
    b2d = bias.reshape(1, N)

    # --------------------------- tile selection ---------------------------
    pack = max(8, 32 // cb)               # sublane pack: 8 f32 / 16 bf16 / 32 i8
    if M >= 1024:                          # prefill: balance tm against tn
        tm = 512
    else:                                  # decode / small M
        tm = min(256, _round_up(M, pack))

    def workset(tn, tk):
        return (2 * tm * tk * cb           # activation slab, double buffered
                + 2 * tn * tk * cb         # weight slab, double buffered
                + 2 * tn * bias_bytes      # bias row, double buffered
                + tm * tn * 4              # f32 accumulator scratch
                + 2 * tm * tn * out_bytes) # output tile, double buffered

    # tn from divisors of vocab (multiples of 128) -> no weight/bias padding.
    tn_cands = [c for c in (2048, 1024, 512, 256, 128) if N % c == 0] or [N]

    tn = tk = None
    for c in tn_cands:                     # prefer full-K slab: W DMA'd once/N tile
        if workset(c, K) <= vmem_budget_bytes:
            tn, tk = c, K
            break
    if tn is None:                         # full-K slab too big -> split K
        tn = tn_cands[-1]
        for c in (2048, 1024, 512, 256, 128):
            if K % c == 0 and workset(tn, c) <= vmem_budget_bytes:
                tk = c
                break
        if tk is None:
            tk = 512                       # last resort (K padded below)

    # Pad only the small activation matrix (and K only in the rare fallback).
    M_pad = _round_up(M, tm)
    K_pad = _round_up(K, tk)
    if M_pad != M or K_pad != K:
        x2d = jnp.pad(x2d, ((0, M_pad - M), (0, K_pad - K)))
    if K_pad != K:
        # Rare fallback (hidden not divisible by any 128-multiple tile).
        w = jnp.pad(w, ((0, 0), (0, K_pad - K)))

    mt = M_pad // tm
    nt = N // tn
    kt = K_pad // tk

    # Real streamed HBM traffic (not just footprints): with K split, the
    # weight K-slab is re-streamed for every M tile; activations are
    # re-streamed for every N tile.
    cost = pl.CostEstimate(
        flops=2 * M * N * K,
        transcendentals=0,
        bytes_accessed=(
            w.size * cb * (mt if kt > 1 else 1)
            + x2d.size * cb * nt
            + N * bias_bytes
            + M_pad * N * out_bytes
        ),
    )

    vmem_limit = min(int(vmem_budget_bytes) + (12 << 20), 48 * 1024 * 1024)
    out_shape = jax.ShapeDtypeStruct((M_pad, N), out_dtype)

    if kt == 1:
        # Full-K slab: weight index depends only on j -> resident across the
        # whole M loop; no accumulator scratch needed.
        out = pl.pallas_call(
            _dec_kernel_fullk,
            out_shape=out_shape,
            grid_spec=pltpu.PrefetchScalarGridSpec(
                num_scalar_prefetch=0,
                grid=(nt, mt),
                in_specs=[
                    pl.BlockSpec((tm, tk), lambda j, i: (i, 0)),
                    pl.BlockSpec((tn, tk), lambda j, i: (j, 0)),
                    pl.BlockSpec((1, tn), lambda j, i: (0, j)),
                ],
                out_specs=pl.BlockSpec((tm, tn), lambda j, i: (i, j)),
            ),
            compiler_params=pltpu.CompilerParams(
                dimension_semantics=("parallel", "parallel"),
                vmem_limit_bytes=vmem_limit,
            ),
            cost_estimate=cost,
        )(x2d, w, b2d)
    else:
        out = pl.pallas_call(
            _dec_kernel_splitk,
            out_shape=out_shape,
            grid_spec=pltpu.PrefetchScalarGridSpec(
                num_scalar_prefetch=0,
                grid=(nt, mt, kt),
                in_specs=[
                    pl.BlockSpec((tm, tk), lambda j, i, k: (i, k)),
                    pl.BlockSpec((tn, tk), lambda j, i, k: (j, k)),
                    pl.BlockSpec((1, tn), lambda j, i, k: (0, j)),
                ],
                out_specs=pl.BlockSpec((tm, tn), lambda j, i, k: (i, j)),
                scratch_shapes=[pltpu.VMEM((tm, tn), jnp.float32)],
            ),
            compiler_params=pltpu.CompilerParams(
                dimension_semantics=("parallel", "parallel", "arbitrary"),
                vmem_limit_bytes=vmem_limit,
            ),
            cost_estimate=cost,
        )(x2d, w, b2d)

    return out[:M].reshape(*lead, N)


# ------------------------------ demo ---------------------------------------


if __name__ == "__main__":
    batch, seq, hidden, vocab = 2, 8, 32, 512

    key = jax.random.PRNGKey(0)
    k_x, k_w = jax.random.split(key)

    # Deterministic parameter init (synthetic; matches PyTorch shapes).
    weight = jax.random.normal(k_w, (vocab, hidden), jnp.float32) * 0.02
    bias = jnp.zeros((vocab,), jnp.float32)          # torch.zeros(vocab_size)
    hidden_states = jax.random.normal(k_x, (batch, seq, hidden), jnp.float32)

    out = decoder_layer(hidden_states, weight, bias)
    out = jax.block_until_ready(out)

    # Reference with matching bf16 operands / f32 accumulation.
    ref_bf16 = jnp.dot(
        hidden_states.astype(jnp.bfloat16),
        weight.astype(jnp.bfloat16).T,
        preferred_element_type=jnp.float32,
    ) + bias
    ref_f32 = hidden_states @ weight.T + bias

    assert out.shape == (batch, seq, vocab)
    assert jnp.allclose(out, ref_bf16, atol=1e-3, rtol=1e-3)
    assert jnp.allclose(out, ref_f32, atol=2e-2, rtol=2e-2)

    print("KERNEL_OK")
</pallas_src>

<mosaic_0001>
module attributes {stable_mosaic.version = 11 : i64} {
  func.func @_dec_kernel_fullk(%arg0: i32, %arg1: i32, %arg2: memref<16x32xbf16, #tpu.memory_space<vmem>>, %arg3: memref<512x32xbf16, #tpu.memory_space<vmem>>, %arg4: memref<1x512xf32, #tpu.memory_space<vmem>>, %arg5: memref<16x512xf32, #tpu.memory_space<vmem>>) attributes {dimension_semantics = [#tpu.dimension_semantics<parallel>, #tpu.dimension_semantics<parallel>], iteration_bounds = array<i64: 1, 1>, scalar_prefetch = 0 : i64, scratch_operands = 0 : i64, tpu.core_type = #tpu.core_type<tc>, window_params = [{transform_indices = @transform_0, window_bounds = array<i64: 16, 32>}, {transform_indices = @transform_1, window_bounds = array<i64: 512, 32>}, {transform_indices = @transform_2, window_bounds = array<i64: 1, 512>}, {transform_indices = @transform_3, window_bounds = array<i64: 16, 512>}]} {
    %c0 = arith.constant 0 : index
    %c0_0 = arith.constant 0 : index
    %0 = vector.load %arg2[%c0, %c0_0] : memref<16x32xbf16, #tpu.memory_space<vmem>>, vector<16x32xbf16>
    %c0_1 = arith.constant 0 : index
    %c0_2 = arith.constant 0 : index
    %1 = vector.load %arg3[%c0_1, %c0_2] : memref<512x32xbf16, #tpu.memory_space<vmem>>, vector<512x32xbf16>
    %cst = arith.constant dense<0.000000e+00> : vector<16x512xf32>
    %2 = tpu.matmul %0, %1, %cst {dimension_numbers = #tpu.dot_dimension_numbers<[1], [1], [0], [0], [0, 0, 1, 0], [], []>} : vector<16x32xbf16>, vector<512x32xbf16>, vector<16x512xf32> -> vector<16x512xf32>
    %c0_3 = arith.constant 0 : index
    %c0_4 = arith.constant 0 : index
    %3 = vector.load %arg4[%c0_3, %c0_4] : memref<1x512xf32, #tpu.memory_space<vmem>>, vector<1x512xf32>
    %4 = vector.broadcast %3 : vector<1x512xf32> to vector<16x512xf32>
    %5 = arith.addf %2, %4 : vector<16x512xf32>
    %c0_5 = arith.constant 0 : index
    %c0_6 = arith.constant 0 : index
    %6 = vector.load %arg5[%c0_5, %c0_6] : memref<16x512xf32, #tpu.memory_space<vmem>>, vector<16x512xf32>
    tpu.vector_store %arg5[%c0_5, %c0_6], %5 {strides = array<i32>} : memref<16x512xf32, #tpu.memory_space<vmem>>, vector<16x512xf32>,
    return
  }
  func.func @transform_0(%arg0: i32, %arg1: i32) -> (i32, i32) {
    %c0_i32 = arith.constant 0 : i32
    %c0_i32_0 = arith.constant 0 : i32
    return %arg1, %c0_i32 : i32, i32
  }
  func.func @transform_1(%arg0: i32, %arg1: i32) -> (i32, i32) {
    %c0_i32 = arith.constant 0 : i32
    %c0_i32_0 = arith.constant 0 : i32
    return %arg0, %c0_i32 : i32, i32
  }
  func.func @transform_2(%arg0: i32, %arg1: i32) -> (i32, i32) {
    %c0_i32 = arith.constant 0 : i32
    %c0_i32_0 = arith.constant 0 : i32
    return %c0_i32, %arg0 : i32, i32
  }
  func.func @transform_3(%arg0: i32, %arg1: i32) -> (i32, i32) {
    %c0_i32 = arith.constant 0 : i32
    return %arg1, %arg0 : i32, i32
  }
}

</mosaic_0001>

<bundles_post_ra>
// kernel: tpu_custom_call.1
= control target key start
LH: loop header
LB: loop body
LE: loop exit
PB: predicated region body
PF: predicated region fallthrough
CT: control target
= control target key end

     0   :  { %vm256_vm0 = vcmask 261120   ;;  %s800_s0 = inlined_call_operand.vmem [shape: bf16[16,32], index: 0, kind: input, shape index: {}]   ;;  %s801_s1 = inlined_call_operand.vmem [shape: bf16[512,32], index: 1, kind: input, shape index: {}]   ;;  %s802_s2 = inlined_call_operand.vmem [shape: f32[1,512], index: 2, kind: input, shape index: {}]   ;;  %s803_s3 = inlined_call_operand.hbm [shape: f32[16,512], index: 3, kind: output, shape index: {}]  }
   0x1   :  { %v582_v0 = vld [vmem:[%s801_s1 + $0x38] sm:$0xff]  ;;  %v581_v8 = vld [vmem:[%s801_s1 + $0x30] sm:$0xff] }
   0x2   :  { %v590_v1 = vld [vmem:[%s801_s1 + $0x78] sm:$0xff]  ;;  %v282_v4 = vsel %vm256_vm0, %v582_v0, 0  ;;  %v589_v9 = vld [vmem:[%s801_s1 + $0x70] sm:$0xff] }
   0x3   :  { %v598_v2 = vld [vmem:[%s801_s1 + $0xb8] sm:$0xff]  ;;  %v306_v5 = vsel %vm256_vm0, %v590_v1, 0  ;;  %356 = vmatpush.bf16.xpose.msra.mxu0 %v282_v4  ;;  %v597_v10 = vld [vmem:[%s801_s1 + $0xb0] sm:$0xff] }
   0x4   :  { %v606_v3 = vld [vmem:[%s801_s1 + $0xf8] sm:$0xff]  ;;  %v330_v6 = vsel %vm256_vm0, %v598_v2, 0  ;;  %370 = vmatpush.bf16.xpose.msra.mxu1 %v306_v5  ;;  %v605_v11 = vld [vmem:[%s801_s1 + $0xf0] sm:$0xff] }
   0x5   :  { %v354_v7 = vsel %vm256_vm0, %v606_v3, 0  ;;  %384 = vmatpush.bf16.xpose.msra.mxu2 %v330_v6 }
   0x6   :  { %398 = vmatpush.bf16.xpose.msra.mxu3 %v354_v7 }
   0x7   :  { %8 = vsyncpa [#allocation3], 0  ;;  %v279_v12 = vsel %vm256_vm0, %v581_v8, 0  ;;  %v303_v13 = vsel %vm256_vm0, %v589_v9, 0  ;;  %v327_v14 = vsel %vm256_vm0, %v597_v10, 0  ;;  %v351_v15 = vsel %vm256_vm0, %v605_v11, 0 }
   0x8   :  { %v580_v16 = vld [vmem:[%s801_s1 + $0x28] sm:$0xff]  ;;  %v579_v24 = vld [vmem:[%s801_s1 + $0x20] sm:$0xff]  ;;  %v578_v32 = vld [vmem:[%s801_s1 + $0x18] sm:$0xff]  ;;  %s426_s27 = sshll.u32 %s803_s3, 4  ;;  %s637_s28 = smov 512   ;;  %s427_s27 = int_to_ptr.hbm [resolvable:$true] %s426_s27 }
   0x9   :  { %v588_v17 = vld [vmem:[%s801_s1 + $0x68] sm:$0xff]  ;;  %v276_v20 = vsel %vm256_vm0, %v580_v16, 0  ;;  %v587_v25 = vld [vmem:[%s801_s1 + $0x60] sm:$0xff]  ;;  %v273_v28 = vsel %vm256_vm0, %v579_v24, 0  ;;  %v586_v33 = vld [vmem:[%s801_s1 + $0x58] sm:$0xff]  ;;  %v270_v36 = vsel %vm256_vm0, %v578_v32, 0 }
   0xa   :  { %v596_v18 = vld [vmem:[%s801_s1 + $0xa8] sm:$0xff]  ;;  %v300_v21 = vsel %vm256_vm0, %v588_v17, 0  ;;  %v595_v26 = vld [vmem:[%s801_s1 + $0xa0] sm:$0xff]  ;;  %v297_v29 = vsel %vm256_vm0, %v587_v25, 0  ;;  %v594_v34 = vld [vmem:[%s801_s1 + $0x98] sm:$0xff]  ;;  %v294_v37 = vsel %vm256_vm0, %v586_v33, 0 }
   0xb   :  { %357 = vmatpush.bf16.xpose.msra.mxu0 %v279_v12  ;;  %v604_v19 = vld [vmem:[%s801_s1 + $0xe8] sm:$0xff]  ;;  %v324_v22 = vsel %vm256_vm0, %v596_v18, 0  ;;  %v603_v27 = vld [vmem:[%s801_s1 + $0xe0] sm:$0xff]  ;;  %v321_v30 = vsel %vm256_vm0, %v595_v26, 0  ;;  %v602_v35 = vld [vmem:[%s801_s1 + $0xd8] sm:$0xff]  ;;  %v318_v38 = vsel %vm256_vm0, %v594_v34, 0 }
   0xc   :  { %371 = vmatpush.bf16.xpose.msra.mxu1 %v303_v13  ;;  %v348_v23 = vsel %vm256_vm0, %v604_v19, 0  ;;  %v345_v31 = vsel %vm256_vm0, %v603_v27, 0  ;;  %v342_v39 = vsel %vm256_vm0, %v602_v35, 0  ;;  %v577_v40 = vld [vmem:[%s801_s1 + $0x10] sm:$0xff]  ;;  %v576_v48 = vld [vmem:[%s801_s1 + $0x8] sm:$0xff]  ;;  %v575_v56 = vld [vmem:[%s801_s1] sm:$0xff] }
   0xd   :  { %385 = vmatpush.bf16.xpose.msra.mxu2 %v327_v14  ;;  %v585_v41 = vld [vmem:[%s801_s1 + $0x50] sm:$0xff]  ;;  %v267_v44 = vsel %vm256_vm0, %v577_v40, 0  ;;  %v584_v49 = vld [vmem:[%s801_s1 + $0x48] sm:$0xff]  ;;  %v264_v52 = vsel %vm256_vm0, %v576_v48, 0  ;;  %v583_v57 = vld [vmem:[%s801_s1 + $0x40] sm:$0xff]  ;;  %v261_v60 = vsel %vm256_vm0, %v575_v56, 0 }
   0xe   :  { %399 = vmatpush.bf16.xpose.msra.mxu3 %v351_v15  ;;  %v593_v42 = vld [vmem:[%s801_s1 + $0x90] sm:$0xff]  ;;  %v291_v45 = vsel %vm256_vm0, %v585_v41, 0  ;;  %v592_v50 = vld [vmem:[%s801_s1 + $0x88] sm:$0xff]  ;;  %v288_v53 = vsel %vm256_vm0, %v584_v49, 0  ;;  %v591_v58 = vld [vmem:[%s801_s1 + $0x80] sm:$0xff]  ;;  %v285_v61 = vsel %vm256_vm0, %v583_v57, 0 }
   0xf   :  { %v601_v43 = vld [vmem:[%s801_s1 + $0xd0] sm:$0xff]  ;;  %v315_v46 = vsel %vm256_vm0, %v593_v42, 0  ;;  %v600_v51 = vld [vmem:[%s801_s1 + $0xc8] sm:$0xff]  ;;  %v312_v54 = vsel %vm256_vm0, %v592_v50, 0  ;;  %v599_v59 = vld [vmem:[%s801_s1 + $0xc0] sm:$0xff]  ;;  %v309_v62 = vsel %vm256_vm0, %v591_v58, 0 }
  0x10   :  { %v339_v47 = vsel %vm256_vm0, %v601_v43, 0  ;;  %v336_v55 = vsel %vm256_vm0, %v600_v51, 0  ;;  %v333_v63 = vsel %vm256_vm0, %v599_v59, 0  ;;  %v574_v0 = vld [vmem:[%s800_s0] sm:$0xff]  ;;  %s636_s0 = smov [#allocation2]   ;;  %s638_s29 = smov 32  }
  0x11   :  { %v81_v1 = vld [vmem:[%s802_s2] sm:$0xf]  ;;  %s424_s2 = sshll.u32 %s636_s0, 4  ;;  %s425_s2 = int_to_ptr.vmem [resolvable:$true] %s424_s2 }
  0x12   :  { %v83_v2 = vperm.slane %v81_v1, 0  ;;  %v84_v3 = vperm.slane %v81_v1, 1  ;;  %v85_v8 = vperm.slane %v81_v1, 2  ;;  %v86_v9 = vperm.slane %v81_v1, 3 }
  0x13   :  { %358 = vmatpush.bf16.xpose.msra.mxu0 %v276_v20 }
  0x14   :  { %372 = vmatpush.bf16.xpose.msra.mxu1 %v300_v21 }
  0x15   :  { %386 = vmatpush.bf16.xpose.msra.mxu2 %v324_v22 }
  0x16   :  { %400 = vmatpush.bf16.xpose.msra.mxu3 %v348_v23 }
  0x1b   :  { %359 = vmatpush.bf16.xpose.msra.mxu0 %v273_v28 }
  0x1c   :  { %373 = vmatpush.bf16.xpose.msra.mxu1 %v297_v29 }
  0x1d   :  { %387 = vmatpush.bf16.xpose.msra.mxu2 %v321_v30 }
  0x1e   :  { %401 = vmatpush.bf16.xpose.msra.mxu3 %v345_v31 }
  0x23   :  { %360 = vmatpush.bf16.xpose.msra.mxu0 %v270_v36 }
  0x24   :  { %374 = vmatpush.bf16.xpose.msra.mxu1 %v294_v37 }
  0x25   :  { %388 = vmatpush.bf16.xpose.msra.mxu2 %v318_v38 }
  0x26   :  { %402 = vmatpush.bf16.xpose.msra.mxu3 %v342_v39 }
  0x2b   :  { %361 = vmatpush.bf16.xpose.msra.mxu0 %v267_v44 }
  0x2c   :  { %375 = vmatpush.bf16.xpose.msra.mxu1 %v291_v45 }
  0x2d   :  { %389 = vmatpush.bf16.xpose.msra.mxu2 %v315_v46 }
  0x2e   :  { %403 = vmatpush.bf16.xpose.msra.mxu3 %v339_v47 }
  0x33   :  { %362 = vmatpush.bf16.xpose.msra.mxu0 %v264_v52 }
  0x34   :  { %376 = vmatpush.bf16.xpose.msra.mxu1 %v288_v53 }
  0x35   :  { %390 = vmatpush.bf16.xpose.msra.mxu2 %v312_v54 }
  0x36   :  { %404 = vmatpush.bf16.xpose.msra.mxu3 %v336_v55 }
  0x3b   :  { %363 = vmatpush.bf16.xpose.msra.mxu0 %v261_v60 }
  0x3c   :  { %377 = vmatpush.bf16.xpose.msra.mxu1 %v285_v61 }
  0x3d   :  { %391 = vmatpush.bf16.xpose.msra.mxu2 %v309_v62 }
  0x3e   :  { %405 = vmatpush.bf16.xpose.msra.mxu3 %v333_v63 }
  0x42   :  { %570 = vmatmul.msk.bf16.vlgmr.msra.gmra.mxu0 %vm256_vm0, %v574_v0 }
  0x43   :  { %571 = vmatmul.msk.bf16.vlgmr.msra.gmra.mxu1 %vm256_vm0, %v574_v0 }
  0x44   :  { %572 = vmatmul.msk.bf16.vlgmr.msra.gmra.mxu2 %vm256_vm0, %v574_v0 }
  0x45   :  { %573 = vmatmul.msk.bf16.vlgmr.msra.gmra.mxu3 %vm256_vm0, %v574_v0 }
  0xbf   :  { %v365_v4 = vpop.f32.mrf.mxu0 }
  0xc0   :  { %v379_v5 = vpop.f32.mrf.mxu1  ;;  %v366_v6 = vadd.f32 %v365_v4, %v83_v2 }
  0xc1   :  { %v380_v7 = vadd.f32 %v379_v5, %v84_v3 }
  0xc2   :  { %412 = vst [vmem:[#allocation2] sm:$0xff] %v366_v6 }
  0xc3   :  { %413 = vst [vmem:[#allocation2 + $0x8] sm:$0xff] %v380_v7 }
  0xc7   :  { %v393_v10 = vpop.f32.mrf.mxu2  ;;  %v367_v14 = vpop.f32.mrf.mxu0 }
  0xc8   :  { %v407_v11 = vpop.f32.mrf.mxu3  ;;  %v394_v12 = vadd.f32 %v393_v10, %v85_v8  ;;  %v381_v15 = vpop.f32.mrf.mxu1  ;;  %v368_v16 = vadd.f32 %v367_v14, %v83_v2 }
  0xc9   :  { %v408_v13 = vadd.f32 %v407_v11, %v86_v9  ;;  %v382_v17 = vadd.f32 %v381_v15, %v84_v3 }
  0xca   :  { %414 = vst [vmem:[#allocation2 + $0x10] sm:$0xff] %v394_v12 }
  0xcb   :  { %415 = vst [vmem:[#allocation2 + $0x18] sm:$0xff] %v408_v13 }
  0xcc   :  { %416 = vst [vmem:[#allocation2 + $0x20] sm:$0xff] %v368_v16 }
  0xcd   :  { %417 = vst [vmem:[#allocation2 + $0x28] sm:$0xff] %v382_v17 }
  0xcf   :  { %v395_v18 = vpop.f32.mrf.mxu2 }
  0xd0   :  { %v409_v19 = vpop.f32.mrf.mxu3  ;;  %v396_v20 = vadd.f32 %v395_v18, %v85_v8 }
  0xd1   :  { %v410_v21 = vadd.f32 %v409_v19, %v86_v9 }
  0xd2   :  { %418 = vst [vmem:[#allocation2 + $0x30] sm:$0xff] %v396_v20 }
  0xd3   :  { %419 = vst [vmem:[#allocation2 + $0x38] sm:$0xff] %v410_v21 }
  0xd4   :  { %432 = dma.vmem_to_hbm [thread:$0]  %s425_s2, 1024, %s427_s27, [#allocation3], %s637_s28, %s637_s28, %s638_s29  }
  0xd5   :  { %634 = dma.done.wait [#allocation3], 1024  }
  0xd6   :  { %635 = vsyncadd [#allocation3], 4294966272 }
  0xd7   :  { %437 = vsyncpa [#allocation3], 1 }

</bundles_post_ra>
